<compile_context>
chip_gen: v7x
topology: tpu7x:2x2x1
jax: 0.10.0
libtpu: 0.0.40
codegen_flags: <defaults>
</compile_context>

<pallas_src>
import functools
import math

import jax
import jax.numpy as jnp
from jax.experimental import pallas as pl
from jax.experimental.pallas import tpu as pltpu


def _pe_kernel(tab_ref, o_ref, *, rows_per_block, pos_per_row):
    """Compute one row-tile of the (packed) positional-encoding table.

    tab_ref : (2, W) f32 per-lane tables, resident in VMEM:
                row 0: angular frequency  (div_term repeated per column pair,
                                           tiled over the packed positions)
                row 1: constant           (pos_off*freq + phase; phase is 0 for
                                           even feature cols, pi/2 for odd)
    o_ref   : (rows_per_block, W) f32 output tile.
    """
    row0 = pl.program_id(0) * rows_per_block
    # (rows, 1) column of global row indices -> base position of each packed row.
    row_idx = jax.lax.broadcasted_iota(jnp.int32, (rows_per_block, 1), 0) + row0
    base_pos = (row_idx * pos_per_row).astype(jnp.float32)           # (rows, 1)

    freq = tab_ref[0:1, :]                                           # (1, W)
    const = tab_ref[1:2, :]                                          # (1, W)

    # cos(x) == sin(x + pi/2): one EUP transcendental per element, no select.
    o_ref[...] = jnp.sin(base_pos * freq + const).astype(o_ref.dtype)


def _device_kind() -> str:
    try:
        return jax.devices()[0].device_kind.lower()
    except Exception:  # pragma: no cover - be robust on exotic backends
        return ""


def positional_encoding(d: int, maxlen: int = 5000) -> jax.Array:
    """Returns pe of shape (1, maxlen, d), float32 — same as the PyTorch module."""
    assert d % 2 == 0, "d must be even (PyTorch code assumes interleaved sin/cos)"

    # Lane-dense packing for arbitrary even d: pack lcm(d,128)//d consecutive
    # positions into one row so the output's last dim is a multiple of 128 and
    # every store is a full-lane vst.
    lane_width = (d * 128) // math.gcd(d, 128)                       # lcm(d, 128)
    pos_per_row = lane_width // d
    rows_total = -(-maxlen // pos_per_row)                           # ceil div
    padded_len = rows_total * pos_per_row

    # Column tables — hoisted out of the kernel; exp runs once here, not per tile.
    div_term = jnp.exp(
        jnp.arange(0, d, 2, dtype=jnp.float32) * -(math.log(10000.0) / d)
    )
    freq_d = jnp.repeat(div_term, 2)                                 # (d,)
    phase_d = jnp.tile(jnp.array([0.0, math.pi / 2.0], jnp.float32), d // 2)
    freq = jnp.tile(freq_d, pos_per_row)                             # (W,)
    pos_off = jnp.repeat(jnp.arange(pos_per_row, dtype=jnp.float32), d)
    const = pos_off * freq + jnp.tile(phase_d, pos_per_row)          # (W,)
    tab = jnp.stack([freq, const], axis=0)                           # (2, W)

    # Generation-aware per-buffer VMEM budget (output tile is double-buffered;
    # the (2, W) table is negligible).  Stays under the scoped-VMEM defaults
    # (v5e: 16 MiB, v6e: 32 MiB, v7x: 32 MiB scoped of 64 MiB physical).
    kind = _device_kind()
    is_v7 = ("v7" in kind) or ("7x" in kind)
    if ("v6" in kind) or is_v7:
        per_buffer_budget = 10 * 1024 * 1024
    else:  # v5e / v5p / unknown -> conservative
        per_buffer_budget = 6 * 1024 * 1024

    bytes_per_row = lane_width * 4
    block_rows = max(8, (per_buffer_budget // bytes_per_row) // 8 * 8)
    if is_v7 and rows_total >= 16:
        # Keep at least two row tiles so CORE_PARALLEL can shard the write
        # stream across both TensorCores.
        half = ((pl.cdiv(rows_total, 2) + 7) // 8) * 8
        block_rows = min(block_rows, half)
    if block_rows >= rows_total:
        block_rows = rows_total                   # single full-array block
    grid = (pl.cdiv(rows_total, block_rows),)

    if is_v7 and grid[0] >= 2:
        # Split row tiles across both v7x TensorCores (write-bandwidth bound).
        dim_sem = (getattr(pltpu, "CORE_PARALLEL", pltpu.PARALLEL),)
    else:
        dim_sem = (pltpu.PARALLEL,)

    kernel = functools.partial(
        _pe_kernel, rows_per_block=block_rows, pos_per_row=pos_per_row
    )

    pe_2d = pl.pallas_call(
        kernel,
        out_shape=jax.ShapeDtypeStruct((rows_total, lane_width), jnp.float32),
        grid=grid,
        in_specs=[pl.BlockSpec((2, lane_width), lambda i: (0, 0))],
        out_specs=pl.BlockSpec((block_rows, lane_width), lambda i: (i, 0)),
        compiler_params=pltpu.CompilerParams(dimension_semantics=dim_sem),
    )(tab)

    pe = pe_2d.reshape(padded_len, d)[:maxlen]
    return pe[None, :, :]                         # (1, maxlen, d)


class PositionalEncodingPallas:
    """Mirrors the PyTorch module: forward(x) ignores x and returns pe."""

    def __init__(self, d, maxlen=5000):
        self.pe = positional_encoding(d, maxlen)

    def __call__(self, x):
        return self.pe


def _reference_pe(d, maxlen):
    positions = jnp.arange(0, maxlen, dtype=jnp.float32)[:, None]
    div_term = jnp.exp(
        jnp.arange(0, d, 2, dtype=jnp.float32) * -(math.log(10000.0) / d)
    )
    pe = jnp.zeros((maxlen, d), jnp.float32)
    pe = pe.at[:, 0::2].set(jnp.sin(positions * div_term))
    pe = pe.at[:, 1::2].set(jnp.cos(positions * div_term))
    return pe[None]


if __name__ == "__main__":
    d = 32
    maxlen = 64
    batch, seq = 2, 8

    # dummy input (ignored by forward, just like the PyTorch module)
    key = jax.random.PRNGKey(0)
    x = jax.random.normal(key, (batch, seq, d), dtype=jnp.float32)

    module = PositionalEncodingPallas(d, maxlen=maxlen)
    out = module(x)
    out = jax.block_until_ready(out)

    ref = _reference_pe(d, maxlen)
    assert out.shape == (1, maxlen, d), out.shape
    assert out.dtype == jnp.float32
    assert jnp.allclose(out, ref, atol=1e-5, rtol=1e-5), float(
        jnp.max(jnp.abs(out - ref))
    )

    print("KERNEL_OK")
</pallas_src>

<mosaic_0001>
module attributes {stable_mosaic.version = 11 : i64} {
  func.func @_pe_kernel(%arg0: i32, %arg1: memref<2x128xf32, #tpu.memory_space<vmem>>, %arg2: memref<16x128xf32, #tpu.memory_space<vmem>>) attributes {dimension_semantics = [#tpu.dimension_semantics<parallel>], iteration_bounds = array<i64: 1>, scalar_prefetch = 0 : i64, scratch_operands = 0 : i64, tpu.core_type = #tpu.core_type<tc>, window_params = [{pipeline_mode = #tpu.pipeline_mode<synchronous>, transform_indices = @transform_0, window_bounds = array<i64: 2, 128>}, {transform_indices = @transform_1, window_bounds = array<i64: 16, 128>}]} {
    %c16_i32 = arith.constant 16 : i32
    %0 = arith.muli %arg0, %c16_i32 : i32
    %1 = tpu.iota {dimensions = array<i32: 0>} : vector<16x1xi32>
    %2 = vector.broadcast %0 : i32 to vector<16x1xi32>
    %3 = arith.addi %1, %2 : vector<16x1xi32>
    %c4_i32 = arith.constant 4 : i32
    %4 = vector.broadcast %c4_i32 : i32 to vector<16x1xi32>
    %5 = arith.muli %3, %4 : vector<16x1xi32>
    %6 = arith.sitofp %5 : vector<16x1xi32> to vector<16x1xf32>
    %c0 = arith.constant 0 : index
    %c0_0 = arith.constant 0 : index
    %7 = vector.load %arg1[%c0, %c0_0] : memref<2x128xf32, #tpu.memory_space<vmem>>, vector<1x128xf32>
    %c1 = arith.constant 1 : index
    %c0_1 = arith.constant 0 : index
    %8 = vector.load %arg1[%c1, %c0_1] : memref<2x128xf32, #tpu.memory_space<vmem>>, vector<1x128xf32>
    %9 = vector.broadcast %6 : vector<16x1xf32> to vector<16x128xf32>
    %10 = vector.broadcast %7 : vector<1x128xf32> to vector<16x128xf32>
    %11 = arith.mulf %9, %10 : vector<16x128xf32>
    %12 = vector.broadcast %8 : vector<1x128xf32> to vector<16x128xf32>
    %13 = arith.addf %11, %12 : vector<16x128xf32>
    %14 = math.sin %13 : vector<16x128xf32>
    %c0_2 = arith.constant 0 : index
    %c0_3 = arith.constant 0 : index
    %15 = vector.load %arg2[%c0_2, %c0_3] : memref<16x128xf32, #tpu.memory_space<vmem>>, vector<16x128xf32>
    tpu.vector_store %arg2[%c0_2, %c0_3], %14 {strides = array<i32>} : memref<16x128xf32, #tpu.memory_space<vmem>>, vector<16x128xf32>,
    return
  }
  func.func @transform_0(%arg0: i32) -> (i32, i32) {
    %c0_i32 = arith.constant 0 : i32
    %c0_i32_0 = arith.constant 0 : i32
    %c0_i32_1 = arith.constant 0 : i32
    return %c0_i32, %c0_i32_0 : i32, i32
  }
  func.func @transform_1(%arg0: i32) -> (i32, i32) {
    %c0_i32 = arith.constant 0 : i32
    %c0_i32_0 = arith.constant 0 : i32
    return %arg0, %c0_i32 : i32, i32
  }
}

</mosaic_0001>

<bundles_post_ra>
// kernel: tpu_custom_call.1
= control target key start
LH: loop header
LB: loop body
LE: loop exit
PB: predicated region body
PF: predicated region fallthrough
CT: control target
= control target key end

     0   :  { %6 = vsyncpa [#allocation3], 0  ;;  %s477_s0 = inlined_call_operand.hbm [shape: f32[2,128], index: 0, kind: input, shape index: {}]   ;;  %s478_s1 = inlined_call_operand.hbm [shape: f32[16,128], index: 1, kind: output, shape index: {}]  }
   0x1   :  { %7 = vsyncpa [#allocation4], 0  ;;  %s357_s6 = smov [#allocation2]   ;;  %s309_s10 = scalar_lea.hbm %s477_s0, 32 }
   0x2   :  { %s14_s7 = sshll.u32 %s357_s6, 4  ;;  %p310_p0 = scmp.ne.s32.totalorder %s477_s0, %s309_s10  ;;  %s15_s7 = int_to_ptr.vmem [resolvable:$true] %s14_s7 }
   0x3   :  { %p313_p1 = scmp.lt.u32.totalorder %s309_s10, %s477_s0 }
   0x5   :  { %p315_p2 = pnand %p313_p1, %p310_p0 }
   0x7   :  { %318 = shalt.err (!%p315_p2)
}
   0x8   :  { %s319_s15 = scalar_lea.vmem %s15_s7, 32  ;;  %p324_p4 = scmp.lt.s32.totalorder %s15_s7, %s15_s7 }
   0x9   :  { %p320_p3 = scmp.ne.s32.totalorder %s15_s7, %s319_s15  ;;  %p325_p5 = scmp.lt.s32.totalorder %s319_s15, %s319_s15 }
   0xb   :  { %p326_p6 = por %p325_p5, %p324_p4 }
   0xd   :  { %p327_p7 = pnand %p326_p6, %p320_p3 }
   0xf   :  { %330 = shalt.err (!%p327_p7)
}
  0x10   :  { %17 = dma.hbm_to_vmem [thread:$0]  %s477_s0, 32, %s15_s7, [#allocation3]  }
  0x11   :  { %353 = dma.done.wait [#allocation3], 32  }
  0x12   :  { %354 = vsyncadd [#allocation3], 4294967264  ;;  %v22_v0 = vlaneseq  ;;  %v273_v6 = vld [vmem:[#allocation2] ss:$0 sm:$0xff]  ;;  %v274_v7 = vld [vmem:[#allocation2 + $0x1] ss:$0 sm:$0xff] }
  0x13   :  { %v358_v32 = vmov 683565275   ;;  %v359_v34 = vmov 2475754826   ;;  %v360_v36 = vmov 2131351028  }
  0x14   :  { %v23_v1 = vshrl.u32 %v22_v0, 7  ;;  %v361_v38 = vmov 2102212464   ;;  %v362_v40 = vmov 920167782   ;;  %s364_s0 = smov [#allocation5]  }
  0x15   :  { %v363_v47 = vmov 1326507024   ;;  %s261_s18 = sshll.u32 %s364_s0, 4  ;;  %s262_s18 = int_to_ptr.vmem [resolvable:$true] %s261_s18 }
  0x16   :  { %v28_v2 = vmul.u32 4, %v23_v1  ;;  %v24_v3 = vadd.s32 8, %v23_v1  ;;  %s331_s19 = scalar_lea.vmem %s262_s18, 256  ;;  %p336_p9 = scmp.lt.s32.totalorder %s262_s18, %s262_s18 }
  0x17   :  { %p332_p8 = scmp.ne.s32.totalorder %s262_s18, %s331_s19  ;;  %p337_p10 = scmp.lt.s32.totalorder %s331_s19, %s331_s19 }
  0x18   :  { %v30_v4 = vcvt.s32.f32 %v28_v2  ;;  %v29_v5 = vmul.u32 4, %v24_v3 }
  0x19   :  { %p338_p11 = por %p337_p10, %p336_p9 }
  0x1a   :  { %v38_v8 = vmul.f32 %v273_v6, %v30_v4  ;;  %v31_v9 = vcvt.s32.f32 %v29_v5 }
  0x1b   :  { %p339_p12 = pnand %p338_p11, %p332_p8 }
  0x1c   :  { %v389_v10 = vadd.f32 %v274_v7, %v38_v8  ;;  %v39_v11 = vmul.f32 %v273_v6, %v31_v9 }
  0x1e   :  { %v46_v12 = vand.u32 2147483647, %v389_v10  ;;  %v49_v13 = vand.u32 2139095040, %v389_v10  ;;  %v393_v14 = vadd.f32 %v274_v7, %v39_v11  ;;  %vm48_vm14 = vcmp.lt.s32.totalorder %v389_v10, 0 }
  0x20   :  { %v50_v15 = vshrl.u32 %v49_v13, 23  ;;  %v53_v16 = vand.u32 8388607, %v46_v12  ;;  %v150_v17 = vand.u32 2147483647, %v393_v14  ;;  %v153_v18 = vand.u32 2139095040, %v393_v14 }
  0x21   :  { %vm47_vm15 = vcmp.le.f32.partialorder %v46_v12, 0.7853982 }
  0x22   :  { %v275_v19 = vadd.s32 4294967169, %v50_v15  ;;  %v154_v20 = vshrl.u32 %v153_v18, 23  ;;  %v54_v22 = vor.u32 8388608, %v53_v16  ;;  %v401_v24 = vand.u32 8388607, %v150_v17 }
  0x24   :  { %v56_v21 = vadd.s32 1, %v275_v19  ;;  %v279_v23 = vadd.s32 4294967169, %v154_v20  ;;  %v403_v29 = vshll.u32 %v54_v22, 8  ;;  %v158_v30 = vor.u32 8388608, %v401_v24 }
  0x26   :  { %vm57_vm0 = vcmp.gt.s32.totalorder %v56_v21, 0  ;;  %v160_v26 = vadd.s32 1, %v279_v23 }
  0x27   :  { %v58_v25 = vsel %vm57_vm0, %v56_v21, 0  ;;  %vm152_vm0 = vcmp.lt.s32.totalorder %v393_v14, 0 }
  0x28   :  { %v59_v27 = vshrl.u32 %v58_v25, 5  ;;  %v60_v28 = vand.u32 31, %v58_v25  ;;  %vm161_vm1 = vcmp.gt.s32.totalorder %v160_v26, 0 }
  0x29   :  { %v162_v52 = vsel %vm161_vm1, %v160_v26, 0  ;;  %vm454_vm1 = vcmp.le.f32.partialorder %v150_v17, 0.7853982 }
  0x2a   :  { %v61_v31 = vsub.s32 32, %v60_v28  ;;  %v63_v33 = vshll.u32 %v358_v32, %v60_v28  ;;  %v66_v35 = vshll.u32 %v359_v34, %v60_v28  ;;  %v69_v37 = vshll.u32 %v360_v36, %v60_v28 }
  0x2b   :  { %v72_v39 = vshll.u32 %v361_v38, %v60_v28  ;;  %v75_v41 = vshll.u32 %v362_v40, %v60_v28  ;;  %vm78_vm2 = vcmp.lt.s32.totalorder %v59_v27, 1  ;;  %vm79_vm3 = vcmp.lt.s32.totalorder %v59_v27, 2 }
  0x2c   :  { %v62_v42 = vshrl.u32 %v358_v32, %v61_v31  ;;  %v64_v43 = vshrl.u32 %v359_v34, %v61_v31  ;;  %v67_v44 = vshrl.u32 %v360_v36, %v61_v31  ;;  %v70_v45 = vshrl.u32 %v361_v38, %v61_v31 }
  0x2d   :  { %v73_v46 = vshrl.u32 %v362_v40, %v61_v31  ;;  %v76_v48 = vshrl.u32 %v363_v47, %v61_v31  ;;  %vm80_vm4 = vcmp.lt.s32.totalorder %v59_v27, 3  ;;  %vm81_vm5 = vcmp.lt.s32.totalorder %v59_v27, 4 }
  0x2e   :  { %v65_v49 = vor.u32 %v64_v43, %v63_v33  ;;  %v68_v50 = vor.u32 %v67_v44, %v66_v35  ;;  %v71_v51 = vor.u32 %v70_v45, %v69_v37  ;;  %v163_v55 = vshrl.u32 %v162_v52, 5 }
  0x2f   :  { %v74_v53 = vor.u32 %v73_v46, %v72_v39  ;;  %v77_v54 = vor.u32 %v76_v48, %v75_v41  ;;  %v164_v56 = vand.u32 31, %v162_v52 }
  0x30   :  { %v82_v57 = vsel %vm78_vm2, %v62_v42, %v65_v49  ;;  %v83_v58 = vsel %vm81_vm5, %v71_v51, 2102212464  ;;  %v86_v59 = vsel %vm78_vm2, %v65_v49, %v68_v50  ;;  %v90_v60 = vsel %vm78_vm2, %v68_v50, %v71_v51 }
  0x31   :  { %v84_v61 = vsel %vm80_vm4, %v68_v50, %v83_v58  ;;  %v87_v62 = vsel %vm81_vm5, %v74_v53, 920167782  ;;  %v91_v63 = vsel %vm81_vm5, %v77_v54, 1326507024  ;;  %v165_v0 = vsub.s32 32, %v164_v56 }
  0x32   :  { %v85_v1 = vsel %vm79_vm3, %v82_v57, %v84_v61  ;;  %v88_v2 = vsel %vm80_vm4, %v71_v51, %v87_v62  ;;  %v92_v3 = vsel %vm80_vm4, %v74_v53, %v91_v63  ;;  %v167_v4 = vshll.u32 %v358_v32, %v164_v56 }
  0x33   :  { %v89_v5 = vsel %vm79_vm3, %v86_v59, %v88_v2  ;;  %v93_v6 = vsel %vm79_vm3, %v90_v60, %v92_v3  ;;  %v101_v7 = vmul.u32 %v403_v29, %v85_v1  ;;  %v166_v8 = vshrl.u32 %v358_v32, %v165_v0 }
  0x34   :  { %v418_v9 = vmul.u32.u64.low %v403_v29, %v93_v6  ;;  %v419_v11 = vmul.u32.u64.high %v403_v29, %v93_v6, %v418_v9  ;;  %v422_v13 = vmul.u32.u64.low %v403_v29, %v89_v5  ;;  %v423_v15 = vmul.u32.u64.high %v403_v29, %v89_v5, %v422_v13 }
  0x35   :  { %v168_v16 = vshrl.u32 %v359_v34, %v165_v0  ;;  %v170_v18 = vshll.u32 %v359_v34, %v164_v56  ;;  %v171_v19 = vshrl.u32 %v360_v36, %v165_v0  ;;  %v173_v20 = vshll.u32 %v360_v36, %v164_v56 }
  0x36   :  { %v174_v21 = vshrl.u32 %v361_v38, %v165_v0  ;;  %v176_v22 = vshll.u32 %v361_v38, %v164_v56  ;;  %v177_v23 = vshrl.u32 %v362_v40, %v165_v0  ;;  %v179_v25 = vshll.u32 %v362_v40, %v164_v56 }
  0x37   :  { %v169_v26 = vor.u32 %v168_v16, %v167_v4  ;;  %v172_v27 = vor.u32 %v171_v19, %v170_v18  ;;  %v180_v28 = vshrl.u32 %v363_v47, %v165_v0  ;;  %vm182_vm6 = vcmp.lt.s32.totalorder %v163_v55, 1 }
  0x38   :  { %vm103_vm7 = vc.u32 %v419_v11, %v422_v13  ;;  %v104_v31 = vadd.s32 1, %v423_v15  ;;  %v175_v32 = vor.u32 %v174_v21, %v173_v20  ;;  %v198_v29 = vshll.u32 %v158_v30, 8 }
  0x39   :  { %v178_v33 = vor.u32 %v177_v23, %v176_v22  ;;  %v181_v34 = vor.u32 %v180_v28, %v179_v25  ;;  %vm183_vm8 = vcmp.lt.s32.totalorder %v163_v55, 2  ;;  %vm184_vm9 = vcmp.lt.s32.totalorder %v163_v55, 3 }
  0x3a   :  { %v105_v35 = vsel %vm103_vm7, %v104_v31, %v423_v15  ;;  %vm185_vm10 = vcmp.lt.s32.totalorder %v163_v55, 4  ;;  %v186_v36 = vsel %vm182_vm6, %v166_v8, %v169_v26  ;;  %v190_v37 = vsel %vm182_vm6, %v169_v26, %v172_v27 }
  0x3b   :  { %v106_v38 = vadd.s32 %v105_v35, %v101_v7  ;;  %v187_v39 = vsel %vm185_vm10, %v175_v32, 2102212464  ;;  %v191_v40 = vsel %vm185_vm10, %v178_v33, 920167782  ;;  %v194_v41 = vsel %vm182_vm6, %v172_v27, %v175_v32 }
  0x3c   :  { %v188_v42 = vsel %vm184_vm9, %v172_v27, %v187_v39  ;;  %v192_v43 = vsel %vm184_vm9, %v175_v32, %v191_v40  ;;  %v195_v24 = vsel %vm185_vm10, %v181_v34, 1326507024  ;;  %v102_v2 = vadd.s32 %v422_v13, %v419_v11 }
  0x3d   :  { %v107_v30 = vadd.s32 536870912, %v106_v38  ;;  %v193_v44 = vsel %vm183_vm8, %v190_v37, %v192_v43  ;;  %v196_v45 = vsel %vm184_vm9, %v178_v33, %v195_v24  ;;  %v189_v46 = vsel %vm183_vm8, %v186_v36, %v188_v42 }
  0x3e   :  { %v197_v47 = vsel %vm183_vm8, %v194_v41, %v196_v45  ;;  %v436_v48 = vmul.u32.u64.low %v198_v29, %v193_v44  ;;  %v437_v49 = vmul.u32.u64.high %v198_v29, %v193_v44, %v436_v48  ;;  %v205_v54 = vmul.u32 %v198_v29, %v189_v46 }
  0x3f   :  { %v108_v50 = vshrl.u32 %v107_v30, 30  ;;  %v439_v51 = vmul.u32.u64.low %v198_v29, %v197_v47  ;;  %v440_v52 = vmul.u32.u64.high %v198_v29, %v197_v47, %v439_v51  ;;  %vm138_vm5 = vweird.f32 %v389_v10 }
  0x40   :  { %v208_v56 = vadd.s32 1, %v437_v49  ;;  %vm242_vm9 = vweird.f32 %v393_v14 }
  0x41   :  { %v109_v53 = vshll.u32 %v108_v50, 30  ;;  %vm207_vm11 = vc.u32 %v440_v52, %v436_v48  ;;  %v132_v26 = vsub.s32 4, %v108_v50  ;;  %v206_v11 = vadd.s32 %v436_v48, %v440_v52 }
  0x42   :  { %v209_v58 = vsel %vm207_vm11, %v208_v56, %v437_v49 }
  0x43   :  { %v110_v57 = vsub.s32 %v106_v38, %v109_v53  ;;  %v210_v60 = vadd.s32 %v209_v58, %v205_v54  ;;  %v133_v33 = vsel %vm48_vm14, %v132_v26, %v108_v50 }
  0x44   :  { %v135_v38 = vsel %vm47_vm15, 0, %v133_v33 }
  0x45   :  { %v112_v59 = vsub.s32 0, %v110_v57  ;;  %v211_v61 = vadd.s32 536870912, %v210_v60  ;;  %v139_v43 = vadd.s32 3, %v135_v38 }
  0x47   :  { %v276_v55 = vmin.u32 %v112_v59, %v110_v57  ;;  %v212_v63 = vshrl.u32 %v211_v61, 30  ;;  %v140_v45 = vand.u32 3, %v139_v43 }
  0x49   :  { %v114_v62 = vclz %v276_v55  ;;  %v213_v1 = vshll.u32 %v212_v63, 30  ;;  %v236_v30 = vsub.s32 4, %v212_v63  ;;  %vm145_vm2 = vcmp.eq.s32.totalorder %v140_v45, 2 }
  0x4a   :  { %vm142_vm3 = vcmp.eq.s32.totalorder %v140_v45, 0  ;;  %vm141_vm4 = vcmp.lt.s32.totalorder %v140_v45, 2 }
  0x4b   :  { %v277_v0 = vadd.s32 4294967294, %v114_v62  ;;  %v214_v4 = vsub.s32 %v210_v60, %v213_v1  ;;  %v237_v47 = vsel %vm152_vm0, %v236_v30, %v212_v63 }
  0x4c   :  { %v239_v51 = vsel %vm454_vm1, 0, %v237_v47 }
  0x4d   :  { %vm278_vm12 = vcmp.lt.s32.totalorder %v277_v0, 0  ;;  %v216_v8 = vsub.s32 0, %v214_v4  ;;  %v243_v56 = vadd.s32 3, %v239_v51 }
  0x4e   :  { %v117_v3 = vsel %vm278_vm12, 0, %v277_v0 }
  0x4f   :  { %v118_v5 = vsub.s32 32, %v117_v3  ;;  %v119_v6 = vshll.u32 %v110_v57, %v117_v3  ;;  %v122_v7 = vsub.s32 4294967266, %v117_v3  ;;  %v280_v16 = vmin.u32 %v216_v8, %v214_v4 }
  0x50   :  { %v244_v60 = vand.u32 3, %v243_v56 }
  0x51   :  { %v120_v9 = vshrl.u32 %v102_v2, %v118_v5  ;;  %v123_v15 = vadd.s32 127, %v122_v7  ;;  %v218_v20 = vclz %v280_v16 }
  0x52   :  { %vm249_vm6 = vcmp.eq.s32.totalorder %v244_v60, 2  ;;  %vm246_vm7 = vcmp.eq.s32.totalorder %v244_v60, 0  ;;  %vm245_vm8 = vcmp.lt.s32.totalorder %v244_v60, 2 }
  0x53   :  { %v121_v18 = vor.u32 %v120_v9, %v119_v6  ;;  %v124_v19 = vshll.u32 %v123_v15, 23  ;;  %v281_v23 = vadd.s32 4294967294, %v218_v20 }
  0x55   :  { %v125_v21 = vor.u32 4788187, %v124_v19  ;;  %v128_v22 = vcvt.s32.f32 %v121_v18  ;;  %vm282_vm13 = vcmp.lt.s32.totalorder %v281_v23, 0 }
  0x56   :  { %v221_v27 = vsel %vm282_vm13, 0, %v281_v23 }
  0x57   :  { %v126_v25 = vand.u32 2147483647, %v125_v21  ;;  %v222_v28 = vsub.s32 32, %v221_v27  ;;  %v223_v31 = vshll.u32 %v214_v4, %v221_v27  ;;  %v226_v32 = vsub.s32 4294967266, %v221_v27 }
  0x59   :  { %v129_v13 = vmul.f32 %v128_v22, %v126_v25  ;;  %v224_v34 = vshrl.u32 %v206_v11, %v222_v28  ;;  %v227_v35 = vadd.s32 127, %v226_v32 }
  0x5b   :  { %v130_v29 = vxor.u32 2147483648, %v129_v13  ;;  %v225_v39 = vor.u32 %v224_v34, %v223_v31  ;;  %v228_v40 = vshll.u32 %v227_v35, 23 }
  0x5d   :  { %v131_v36 = vsel %vm48_vm14, %v130_v29, %v129_v13  ;;  %v229_v41 = vor.u32 4788187, %v228_v40  ;;  %v232_v42 = vcvt.s32.f32 %v225_v39 }
  0x5e   :  { %v134_v37 = vsel %vm47_vm15, %v389_v10, %v131_v36 }
  0x5f   :  { %301 = vcosq.f32 %v134_v37  ;;  %v230_v24 = vand.u32 2147483647, %v229_v41 }
  0x60   :  { %303 = vsinq.f32 %v134_v37 }
  0x61   :  { %v233_v44 = vmul.f32 %v232_v42, %v230_v24 }
  0x63   :  { %v234_v46 = vxor.u32 2147483648, %v233_v44 }
  0x65   :  { %v235_v48 = vsel %vm152_vm0, %v234_v46, %v233_v44 }
  0x66   :  { %v238_v50 = vsel %vm454_vm1, %v393_v14, %v235_v48 }
  0x67   :  { %305 = vcosq.f32 %v238_v50 }
  0x68   :  { %307 = vsinq.f32 %v238_v50 }
  0x69   :  { %v302_v49 = vpop.eup %301 }
  0x6a   :  { %v304_v52 = vpop.eup %303  ;;  %v146_v53 = vxor.u32 2147483648, %v302_v49 }
  0x6b   :  { %v143_v17 = vxor.u32 2147483648, %v304_v52 }
  0x6c   :  { %v147_v54 = vsel %vm145_vm2, %v146_v53, %v304_v52 }
  0x6d   :  { %v144_v57 = vsel %vm142_vm3, %v302_v49, %v143_v17 }
  0x6e   :  { %v148_v58 = vsel %vm141_vm4, %v144_v57, %v147_v54 }
  0x6f   :  { %v149_v59 = vsel %vm138_vm5, nan, %v148_v58 }
  0x70   :  { %254 = vst [vmem:[#allocation5] sm:$0xff] %v149_v59 }
  0x71   :  { %v306_v55 = vpop.eup %305 }
  0x72   :  { %v308_v61 = vpop.eup %307  ;;  %v250_v62 = vxor.u32 2147483648, %v306_v55 }
  0x73   :  { %v247_v63 = vxor.u32 2147483648, %v308_v61 }
  0x74   :  { %v251_v0 = vsel %vm249_vm6, %v250_v62, %v308_v61 }
  0x75   :  { %v248_v10 = vsel %vm246_vm7, %v306_v55, %v247_v63 }
  0x76   :  { %v252_v1 = vsel %vm245_vm8, %v248_v10, %v251_v0 }
  0x77   :  { %v253_v2 = vsel %vm242_vm9, nan, %v252_v1 }
  0x78   :  { %255 = vst [vmem:[#allocation5 + $0x8] sm:$0xff] %v253_v2 }
  0x79   :  { %342 = shalt.err (!%p339_p12)
}
  0x7a   :  { %s343_s22 = scalar_lea.hbm %s478_s1, 256 }
  0x7b   :  { %p344_p13 = scmp.ne.s32.totalorder %s478_s1, %s343_s22  ;;  %p347_p0 = scmp.lt.u32.totalorder %s343_s22, %s478_s1 }
  0x7d   :  { %p349_p1 = pnand %p347_p0, %p344_p13 }
  0x7f   :  { %352 = shalt.err (!%p349_p1)
}
  0x80   :  { %s365_s27 = smov 128   ;;  %s366_s28 = smov 8  }
  0x81   :  { %267 = dma.vmem_to_hbm [thread:$0]  %s262_s18, 256, %s478_s1, [#allocation4], %s365_s27, %s365_s27, %s366_s28  }
  0x82   :  { %355 = dma.done.wait [#allocation4], 256  }
  0x83   :  { %356 = vsyncadd [#allocation4], 4294967040 }
  0x84   :  { %271 = vsyncpa [#allocation3], 1 }
  0x85   :  { %272 = vsyncpa [#allocation4], 1 }

</bundles_post_ra>
